<compile_context>
chip_gen: v6e
topology: v6e:2x2x1
jax: 0.10.0
libtpu: 0.0.40
codegen_flags: <defaults>
</compile_context>

<pallas_src>
import functools

import jax
import jax.numpy as jnp
import numpy as np
from jax import lax
from jax.experimental import pallas as pl
from jax.experimental.pallas import tpu as pltpu


# ----------------------------------------------------------------------------
# Fused Pallas kernel: the whole TCN_net for one batch tile per grid step.
# ----------------------------------------------------------------------------
def tcn_net_kernel(*refs, layer_specs, K, padw):
    # refs = (x_ref, pos_ref, *param_refs, o_ref, scr_ref)
    #   x_ref   : (c_in0_p, T)        batch-folded input tile (T = B_tile * L)
    #   pos_ref : (c_scr, T) int32    segment-local time index of every lane
    #   params  : per layer  w1 (K, c_out_p, c_in_p), b1 (c_out_p, 1),
    #                        w2 (K, c_out_p, c_out_p), b2 (c_out_p, 1),
    #                        [wd (c_out_p, c_in_p), bd (c_out_p, 1)]  if c_in!=c_out
    #   o_ref   : (c_last_p, T)       batch-folded output tile
    #   scr_ref : (c_scr, padw + T)   resident activation; first padw lanes = 0
    x_ref, pos_ref = refs[0], refs[1]
    o_ref, scr_ref = refs[-2], refs[-1]
    param_refs = refs[2:-2]

    T = x_ref.shape[-1]
    c_scr = scr_ref.shape[0]
    num_layers = len(layer_specs)

    # Keep the causal-pad lanes zero.  Re-done every grid step: scratch VMEM is
    # never implicitly zeroed and with a "parallel" batch axis each TensorCore
    # owns its own scratch instance.  (One aligned 8 x 128 store.)
    scr_ref[:, :padw] = jnp.zeros((c_scr, padw), jnp.float32)

    # Segment-local time index per lane (precomputed host-side so no in-kernel
    # integer modulo is needed).  ~2 vregs, loaded once.
    pos = pos_ref[...]

    # Stage this tile's input into the lane-aligned live region of the scratch
    # (in-kernel causal padding; no wrapper-side jnp.pad of the time axis).
    c_in0 = layer_specs[0][0]
    scr_ref[:c_in0, padw:] = x_ref[...]

    def dilated_causal_conv(w_ref, c_rows, dilation):
        # K accumulating per-tap MXU matmuls; each tap is a shifted view of
        # the scratch live region, masked so segments (batch elements) folded
        # along the lane axis never read each other's tails.
        acc = None
        for j in range(K):
            s = (K - 1 - j) * dilation
            tap = scr_ref[:c_rows, padw - s: padw - s + T]
            if s > 0:
                tap = jnp.where(pos[:c_rows] >= s, tap, 0.0)
            d = jnp.dot(w_ref[j], tap, preferred_element_type=jnp.float32)
            acc = d if acc is None else acc + d
        return acc

    p = 0
    for li, (c_in, c_out, dilation, has_down) in enumerate(layer_specs):
        w1, b1, w2, b2 = param_refs[p], param_refs[p + 1], param_refs[p + 2], param_refs[p + 3]
        p += 4
        if has_down:
            wd, bd = param_refs[p], param_refs[p + 1]
            p += 2

        # ---- conv1 (causal, dilated) ---------------------------------------
        h1 = jnp.maximum(dilated_causal_conv(w1, c_in, dilation) + b1[...], 0.0)
        # TODO(synk): dropout layers are identity in eval/inference mode.

        # Residual-branch input, loaded before the live region is overwritten.
        # (c_in, T) is ~2 vregs at these sizes; at realistic channel counts
        # keep a second scratch and re-read just before the residual add.
        x_res = scr_ref[:c_in, padw:]

        # ---- conv2 (causal, dilated) on the hidden activation ---------------
        scr_ref[:c_out, padw:] = h1                     # aligned lane-dense store
        h2 = jnp.maximum(dilated_causal_conv(w2, c_out, dilation) + b2[...], 0.0)

        # ---- residual: 1x1 conv only when channel counts differ -------------
        if has_down:
            res = jnp.dot(wd[...], x_res,
                          preferred_element_type=jnp.float32) + bd[...]
        else:
            res = x_res                 # downsample is None -> identity
        out = jnp.maximum(h2 + res, 0.0)

        if li == num_layers - 1:
            o_ref[...] = out            # full-block, aligned, lane-dense store
        else:
            scr_ref[:c_out, padw:] = out  # stays resident for the next layer


# ----------------------------------------------------------------------------
# Wrapper: one pallas_call for the whole network, gridded over batch tiles.
# ----------------------------------------------------------------------------
def _round_up(x, m):
    return ((x + m - 1) // m) * m


def _const_index(nd, n):
    return (0,) * nd


def _pick_batch_tile(N, L):
    """Largest batch tile whose lane width is a multiple of 256 (128 fallback),
    preferring >=2 grid steps so v7x's two TensorCores both get work."""
    divisors = [d for d in range(1, N + 1) if N % d == 0]
    for lane_mult in (256, 128):
        good = [d for d in divisors if (d * L) % lane_mult == 0]
        if good:
            multi = [d for d in good if N // d >= 2]
            return max(multi) if multi else max(good)
    return N  # tiny problem: single step; accept masked stores


def tcn_net(x, kernel_params, *, kernel_size, out_channels):
    """Fused TCN_net forward (stride=1).  x: (N, C_in0, L) f32 -> (N, C_out, L)."""
    N, c_in0, L = x.shape
    K = kernel_size
    num_layers = len(kernel_params)

    b_tile = _pick_batch_tile(N, L)
    tile = b_tile * L
    grid = (N // b_tile,)

    # Causal-pad region, rounded up to a lane tile so the live region is
    # 128-aligned.
    max_shift = (K - 1) * (2 ** (num_layers - 1))
    padw = _round_up(max(max_shift, 1), 128)

    layer_specs = []
    flat_params = []
    param_specs = []
    c_scr = 0
    for li, (w1, b1, w2, b2, wd, bd) in enumerate(kernel_params):
        c_out_p, c_in_p = w1.shape[1], w1.shape[2]
        has_down = wd is not None
        layer_specs.append((c_in_p, c_out_p, 2 ** li, has_down))
        arrays = [w1, b1, w2, b2] + ([wd, bd] if has_down else [])
        for a in arrays:
            # Constant blocks (same tile every grid step).
            param_specs.append(pl.BlockSpec(a.shape,
                                            functools.partial(_const_index, a.ndim)))
            flat_params.append(a)
        c_scr = max(c_scr, c_in_p, c_out_p)
    c_in0_p = layer_specs[0][0]
    c_last_p = layer_specs[-1][1]

    # Host-side layout plumbing (not compute): fold batch into the lane axis
    # and zero-pad channels to a sublane multiple.
    x2d = jnp.transpose(x, (1, 0, 2)).reshape(c_in0, N * L)
    x2d = jnp.pad(x2d, ((0, c_in0_p - c_in0), (0, 0)))

    # Segment-local time index for each lane of one tile (same for all tiles).
    pos_tile = jnp.tile(jnp.arange(L, dtype=jnp.int32), (c_scr, b_tile))

    in_specs = ([pl.BlockSpec((c_in0_p, tile), lambda n: (0, n)),
                 pl.BlockSpec((c_scr, tile), lambda n: (0, 0))]
                + param_specs)

    kern = functools.partial(tcn_net_kernel,
                             layer_specs=tuple(layer_specs), K=K, padw=padw)

    out2d = pl.pallas_call(
        kern,
        out_shape=jax.ShapeDtypeStruct((c_last_p, N * L), jnp.float32),
        grid=grid,
        in_specs=in_specs,
        out_specs=pl.BlockSpec((c_last_p, tile), lambda n: (0, n)),
        # TODO(synk): for realistic L, halo-tile the lane axis instead of one
        # resident full-length scratch (v7x 64 MiB VMEM budget).
        scratch_shapes=[pltpu.VMEM((c_scr, padw + tile), jnp.float32)],
        compiler_params=pltpu.CompilerParams(
            dimension_semantics=("parallel",)),
    )(x2d, pos_tile, *flat_params)

    # Undo the batch folding / channel padding (layout plumbing in the wrapper).
    out = out2d[:out_channels].reshape(out_channels, N, L).transpose(1, 0, 2)
    return out


# ----------------------------------------------------------------------------
# Pure-JAX reference (correctness check).
# ----------------------------------------------------------------------------
def _ref_causal_conv(x, w, b, dilation):
    # x: (N, C_in, L), w: (C_out, C_in, K), b: (C_out,)
    K = w.shape[-1]
    p = (K - 1) * dilation
    y = lax.conv_general_dilated(
        x, w, window_strides=(1,), padding=[(p, 0)],
        rhs_dilation=(dilation,), dimension_numbers=("NCH", "OIH", "NCH"),
        precision=lax.Precision.HIGHEST)
    return y + b[None, :, None]


def ref_tcn_net(x, ref_params, *, kernel_size):
    out = x
    for i, (w1, b1, w2, b2, wd, bd) in enumerate(ref_params):
        d = 2 ** i
        h = jnp.maximum(_ref_causal_conv(out, w1, b1, d), 0.0)
        h = jnp.maximum(_ref_causal_conv(h, w2, b2, d), 0.0)
        if wd is None:
            res = out
        else:
            res = jnp.einsum("oi,nil->nol", wd, out,
                             precision=lax.Precision.HIGHEST) + bd[None, :, None]
        out = jnp.maximum(h + res, 0.0)
    return out


# ----------------------------------------------------------------------------
# Deterministic parameter construction (weight_norm folded into effective W).
# ----------------------------------------------------------------------------
def _weight_norm_conv(key, c_out, c_in, k):
    kv, kg, kb = jax.random.split(key, 3)
    v = 0.01 * jax.random.normal(kv, (c_out, c_in, k), jnp.float32)
    g = 1.0 + 0.1 * jax.random.uniform(kg, (c_out, 1, 1), jnp.float32)
    w = g * v / jnp.sqrt(jnp.sum(v * v, axis=(1, 2), keepdims=True))
    b = 0.01 * jax.random.normal(kb, (c_out,), jnp.float32)
    return w, b  # (c_out, c_in, K), (c_out,)


def _round8(c):
    return ((c + 7) // 8) * 8


def make_tcn_params(key, input_channels, n_channels, kernel_size):
    """Returns (kernel_params, ref_params).

    kernel_params[i] (kernel layout, channels zero-padded to multiples of 8):
      w1: (K, c_out_p, c_in_p)   per-tap weight slices
      b1: (c_out_p, 1)
      w2: (K, c_out_p, c_out_p)
      b2: (c_out_p, 1)
      wd: (c_out_p, c_in_p) or None   (1x1 downsample, only if c_in != c_out)
      bd: (c_out_p, 1) or None
    ref_params[i] holds the unpadded PyTorch-layout tensors for the reference.
    """
    K = kernel_size
    kernel_params, ref_params = [], []
    c_prev = input_channels
    for c_out in n_channels:
        key, k1, k2, kd = jax.random.split(key, 4)
        w1, b1 = _weight_norm_conv(k1, c_out, c_prev, K)
        w2, b2 = _weight_norm_conv(k2, c_out, c_out, K)
        if c_prev != c_out:
            kdw, kdb = jax.random.split(kd)
            wd = 0.1 * jax.random.normal(kdw, (c_out, c_prev), jnp.float32)
            bd = 0.01 * jax.random.normal(kdb, (c_out,), jnp.float32)
        else:
            wd, bd = None, None  # downsample is None -> identity residual
        ref_params.append((w1, b1, w2, b2, wd, bd))

        c_in_p, c_out_p = _round8(c_prev), _round8(c_out)
        w1k = jnp.pad(jnp.transpose(w1, (2, 0, 1)),
                      ((0, 0), (0, c_out_p - c_out), (0, c_in_p - c_prev)))
        w2k = jnp.pad(jnp.transpose(w2, (2, 0, 1)),
                      ((0, 0), (0, c_out_p - c_out), (0, c_out_p - c_out)))
        b1k = jnp.pad(b1, (0, c_out_p - c_out)).reshape(c_out_p, 1)
        b2k = jnp.pad(b2, (0, c_out_p - c_out)).reshape(c_out_p, 1)
        if wd is not None:
            wdk = jnp.pad(wd, ((0, c_out_p - c_out), (0, c_in_p - c_prev)))
            bdk = jnp.pad(bd, (0, c_out_p - c_out)).reshape(c_out_p, 1)
        else:
            wdk, bdk = None, None
        kernel_params.append((w1k, b1k, w2k, b2k, wdk, bdk))
        c_prev = c_out
    return kernel_params, ref_params


if __name__ == "__main__":
    # TCN_net(input_channels=4, n_channels=[8, 8], kernel_size=3, stride=1,
    #         dropout=0.1)  -- inference forward.
    # Batch folded into lanes: 16*32 = 512 lanes total -> two 256-lane,
    # "parallel" grid steps (one per v7x TensorCore; few & large on v5e/v6e).
    input_channels = 4
    n_channels = (8, 8)
    kernel_size = 3
    N, L = 16, 32

    key = jax.random.PRNGKey(0)
    key, kx = jax.random.split(key)
    x = jax.random.normal(kx, (N, input_channels, L), jnp.float32)
    kernel_params, ref_params = make_tcn_params(key, input_channels,
                                                n_channels, kernel_size)

    out = tcn_net(x, kernel_params, kernel_size=kernel_size,
                  out_channels=n_channels[-1])
    out = jax.block_until_ready(out)

    ref = ref_tcn_net(x, ref_params, kernel_size=kernel_size)
    # Tolerance documents the MXU default-precision matmul in the kernel vs.
    # the lax.Precision.HIGHEST reference; structural errors would be O(1).
    np.testing.assert_allclose(np.asarray(out), np.asarray(ref),
                               rtol=2e-2, atol=2e-3)
    print("KERNEL_OK")
</pallas_src>

<mosaic_0001>
module attributes {stable_mosaic.version = 11 : i64} {
  func.func @tcn_net_kernel(%arg0: i32, %arg1: memref<8x256xf32, #tpu.memory_space<vmem>>, %arg2: memref<8x256xi32, #tpu.memory_space<vmem>>, %arg3: memref<3x8x8xf32, #tpu.memory_space<vmem>>, %arg4: memref<8x1xf32, #tpu.memory_space<vmem>>, %arg5: memref<3x8x8xf32, #tpu.memory_space<vmem>>, %arg6: memref<8x1xf32, #tpu.memory_space<vmem>>, %arg7: memref<8x8xf32, #tpu.memory_space<vmem>>, %arg8: memref<8x1xf32, #tpu.memory_space<vmem>>, %arg9: memref<3x8x8xf32, #tpu.memory_space<vmem>>, %arg10: memref<8x1xf32, #tpu.memory_space<vmem>>, %arg11: memref<3x8x8xf32, #tpu.memory_space<vmem>>, %arg12: memref<8x1xf32, #tpu.memory_space<vmem>>, %arg13: memref<8x256xf32, #tpu.memory_space<vmem>>, %arg14: memref<8x384xf32, #tpu.memory_space<vmem>>) attributes {dimension_semantics = [#tpu.dimension_semantics<parallel>], iteration_bounds = array<i64: 2>, scalar_prefetch = 0 : i64, scratch_operands = 1 : i64, tpu.core_type = #tpu.core_type<tc>, window_params = [{transform_indices = @transform_0, window_bounds = array<i64: 8, 256>}, {pipeline_mode = #tpu.pipeline_mode<synchronous>, transform_indices = @transform_1, window_bounds = array<i64: 8, 256>}, {pipeline_mode = #tpu.pipeline_mode<synchronous>, transform_indices = @transform_2, window_bounds = array<i64: 3, 8, 8>}, {pipeline_mode = #tpu.pipeline_mode<synchronous>, transform_indices = @transform_3, window_bounds = array<i64: 8, 1>}, {pipeline_mode = #tpu.pipeline_mode<synchronous>, transform_indices = @transform_4, window_bounds = array<i64: 3, 8, 8>}, {pipeline_mode = #tpu.pipeline_mode<synchronous>, transform_indices = @transform_5, window_bounds = array<i64: 8, 1>}, {pipeline_mode = #tpu.pipeline_mode<synchronous>, transform_indices = @transform_6, window_bounds = array<i64: 8, 8>}, {pipeline_mode = #tpu.pipeline_mode<synchronous>, transform_indices = @transform_7, window_bounds = array<i64: 8, 1>}, {pipeline_mode = #tpu.pipeline_mode<synchronous>, transform_indices = @transform_8, window_bounds = array<i64: 3, 8, 8>}, {pipeline_mode = #tpu.pipeline_mode<synchronous>, transform_indices = @transform_9, window_bounds = array<i64: 8, 1>}, {pipeline_mode = #tpu.pipeline_mode<synchronous>, transform_indices = @transform_10, window_bounds = array<i64: 3, 8, 8>}, {pipeline_mode = #tpu.pipeline_mode<synchronous>, transform_indices = @transform_11, window_bounds = array<i64: 8, 1>}, {transform_indices = @transform_12, window_bounds = array<i64: 8, 256>}]} {
    %cst = arith.constant 0.000000e+00 : f32
    %0 = vector.broadcast %cst : f32 to vector<8x128xf32>
    %c0 = arith.constant 0 : index
    %c0_0 = arith.constant 0 : index
    %1 = vector.load %arg14[%c0, %c0_0] : memref<8x384xf32, #tpu.memory_space<vmem>>, vector<8x128xf32>
    tpu.vector_store %arg14[%c0, %c0_0], %0 {strides = array<i32>} : memref<8x384xf32, #tpu.memory_space<vmem>>, vector<8x128xf32>,
    %c0_1 = arith.constant 0 : index
    %c0_2 = arith.constant 0 : index
    %2 = vector.load %arg2[%c0_1, %c0_2] : memref<8x256xi32, #tpu.memory_space<vmem>>, vector<8x256xi32>
    %c0_3 = arith.constant 0 : index
    %c0_4 = arith.constant 0 : index
    %3 = vector.load %arg1[%c0_3, %c0_4] : memref<8x256xf32, #tpu.memory_space<vmem>>, vector<8x256xf32>
    %c0_5 = arith.constant 0 : index
    %c128 = arith.constant 128 : index
    %4 = vector.load %arg14[%c0_5, %c128] : memref<8x384xf32, #tpu.memory_space<vmem>>, vector<8x256xf32>
    tpu.vector_store %arg14[%c0_5, %c128], %3 {strides = array<i32>} : memref<8x384xf32, #tpu.memory_space<vmem>>, vector<8x256xf32>,
    %c0_6 = arith.constant 0 : index
    %c126 = arith.constant 126 : index
    %5 = vector.load %arg14[%c0_6, %c126] : memref<8x384xf32, #tpu.memory_space<vmem>>, vector<8x256xf32>
    %c2_i32 = arith.constant 2 : i32
    %6 = vector.broadcast %c2_i32 : i32 to vector<8x256xi32>
    %7 = arith.cmpi sge, %2, %6 : vector<8x256xi32>
    %cst_7 = arith.constant 0.000000e+00 : f32
    %8 = vector.broadcast %cst_7 : f32 to vector<8x256xf32>
    %9 = arith.select %7, %5, %8 : vector<8x256xi1>, vector<8x256xf32>
    %c0_8 = arith.constant 0 : index
    %c0_9 = arith.constant 0 : index
    %c0_10 = arith.constant 0 : index
    %10 = vector.load %arg3[%c0_8, %c0_9, %c0_10] : memref<3x8x8xf32, #tpu.memory_space<vmem>>, vector<1x8x8xf32>
    %11 = vector.shape_cast %10 : vector<1x8x8xf32> to vector<8x8xf32>
    %cst_11 = arith.constant dense<0.000000e+00> : vector<8x256xf32>
    %12 = tpu.matmul %11, %9, %cst_11 {dimension_numbers = #tpu.dot_dimension_numbers<[1], [0], [0], [1], [0, 0, 1, 1], [], []>} : vector<8x8xf32>, vector<8x256xf32>, vector<8x256xf32> -> vector<8x256xf32>
    %c0_12 = arith.constant 0 : index
    %c127 = arith.constant 127 : index
    %13 = vector.load %arg14[%c0_12, %c127] : memref<8x384xf32, #tpu.memory_space<vmem>>, vector<8x256xf32>
    %c1_i32 = arith.constant 1 : i32
    %14 = vector.broadcast %c1_i32 : i32 to vector<8x256xi32>
    %15 = arith.cmpi sge, %2, %14 : vector<8x256xi32>
    %cst_13 = arith.constant 0.000000e+00 : f32
    %16 = vector.broadcast %cst_13 : f32 to vector<8x256xf32>
    %17 = arith.select %15, %13, %16 : vector<8x256xi1>, vector<8x256xf32>
    %c1 = arith.constant 1 : index
    %c0_14 = arith.constant 0 : index
    %c0_15 = arith.constant 0 : index
    %18 = vector.load %arg3[%c1, %c0_14, %c0_15] : memref<3x8x8xf32, #tpu.memory_space<vmem>>, vector<1x8x8xf32>
    %19 = vector.shape_cast %18 : vector<1x8x8xf32> to vector<8x8xf32>
    %cst_16 = arith.constant dense<0.000000e+00> : vector<8x256xf32>
    %20 = tpu.matmul %19, %17, %cst_16 {dimension_numbers = #tpu.dot_dimension_numbers<[1], [0], [0], [1], [0, 0, 1, 1], [], []>} : vector<8x8xf32>, vector<8x256xf32>, vector<8x256xf32> -> vector<8x256xf32>
    %21 = arith.addf %12, %20 : vector<8x256xf32>
    %c0_17 = arith.constant 0 : index
    %c128_18 = arith.constant 128 : index
    %22 = vector.load %arg14[%c0_17, %c128_18] : memref<8x384xf32, #tpu.memory_space<vmem>>, vector<8x256xf32>
    %c2 = arith.constant 2 : index
    %c0_19 = arith.constant 0 : index
    %c0_20 = arith.constant 0 : index
    %23 = vector.load %arg3[%c2, %c0_19, %c0_20] : memref<3x8x8xf32, #tpu.memory_space<vmem>>, vector<1x8x8xf32>
    %24 = vector.shape_cast %23 : vector<1x8x8xf32> to vector<8x8xf32>
    %cst_21 = arith.constant dense<0.000000e+00> : vector<8x256xf32>
    %25 = tpu.matmul %24, %22, %cst_21 {dimension_numbers = #tpu.dot_dimension_numbers<[1], [0], [0], [1], [0, 0, 1, 1], [], []>} : vector<8x8xf32>, vector<8x256xf32>, vector<8x256xf32> -> vector<8x256xf32>
    %26 = arith.addf %21, %25 : vector<8x256xf32>
    %c0_22 = arith.constant 0 : index
    %c0_23 = arith.constant 0 : index
    %27 = vector.load %arg4[%c0_22, %c0_23] : memref<8x1xf32, #tpu.memory_space<vmem>>, vector<8x1xf32>
    %28 = vector.broadcast %27 : vector<8x1xf32> to vector<8x256xf32>
    %29 = arith.addf %26, %28 : vector<8x256xf32>
    %cst_24 = arith.constant 0.000000e+00 : f32
    %30 = vector.broadcast %cst_24 : f32 to vector<8x256xf32>
    %31 = arith.maximumf %29, %30 : vector<8x256xf32>
    %c0_25 = arith.constant 0 : index
    %c128_26 = arith.constant 128 : index
    %32 = vector.load %arg14[%c0_25, %c128_26] : memref<8x384xf32, #tpu.memory_space<vmem>>, vector<8x256xf32>
    %c0_27 = arith.constant 0 : index
    %c128_28 = arith.constant 128 : index
    %33 = vector.load %arg14[%c0_27, %c128_28] : memref<8x384xf32, #tpu.memory_space<vmem>>, vector<8x256xf32>
    tpu.vector_store %arg14[%c0_27, %c128_28], %31 {strides = array<i32>} : memref<8x384xf32, #tpu.memory_space<vmem>>, vector<8x256xf32>,
    %c0_29 = arith.constant 0 : index
    %c126_30 = arith.constant 126 : index
    %34 = vector.load %arg14[%c0_29, %c126_30] : memref<8x384xf32, #tpu.memory_space<vmem>>, vector<8x256xf32>
    %c2_i32_31 = arith.constant 2 : i32
    %35 = vector.broadcast %c2_i32_31 : i32 to vector<8x256xi32>
    %36 = arith.cmpi sge, %2, %35 : vector<8x256xi32>
    %cst_32 = arith.constant 0.000000e+00 : f32
    %37 = vector.broadcast %cst_32 : f32 to vector<8x256xf32>
    %38 = arith.select %36, %34, %37 : vector<8x256xi1>, vector<8x256xf32>
    %c0_33 = arith.constant 0 : index
    %c0_34 = arith.constant 0 : index
    %c0_35 = arith.constant 0 : index
    %39 = vector.load %arg5[%c0_33, %c0_34, %c0_35] : memref<3x8x8xf32, #tpu.memory_space<vmem>>, vector<1x8x8xf32>
    %40 = vector.shape_cast %39 : vector<1x8x8xf32> to vector<8x8xf32>
    %cst_36 = arith.constant dense<0.000000e+00> : vector<8x256xf32>
    %41 = tpu.matmul %40, %38, %cst_36 {dimension_numbers = #tpu.dot_dimension_numbers<[1], [0], [0], [1], [0, 0, 1, 1], [], []>} : vector<8x8xf32>, vector<8x256xf32>, vector<8x256xf32> -> vector<8x256xf32>
    %c0_37 = arith.constant 0 : index
    %c127_38 = arith.constant 127 : index
    %42 = vector.load %arg14[%c0_37, %c127_38] : memref<8x384xf32, #tpu.memory_space<vmem>>, vector<8x256xf32>
    %c1_i32_39 = arith.constant 1 : i32
    %43 = vector.broadcast %c1_i32_39 : i32 to vector<8x256xi32>
    %44 = arith.cmpi sge, %2, %43 : vector<8x256xi32>
    %cst_40 = arith.constant 0.000000e+00 : f32
    %45 = vector.broadcast %cst_40 : f32 to vector<8x256xf32>
    %46 = arith.select %44, %42, %45 : vector<8x256xi1>, vector<8x256xf32>
    %c1_41 = arith.constant 1 : index
    %c0_42 = arith.constant 0 : index
    %c0_43 = arith.constant 0 : index
    %47 = vector.load %arg5[%c1_41, %c0_42, %c0_43] : memref<3x8x8xf32, #tpu.memory_space<vmem>>, vector<1x8x8xf32>
    %48 = vector.shape_cast %47 : vector<1x8x8xf32> to vector<8x8xf32>
    %cst_44 = arith.constant dense<0.000000e+00> : vector<8x256xf32>
    %49 = tpu.matmul %48, %46, %cst_44 {dimension_numbers = #tpu.dot_dimension_numbers<[1], [0], [0], [1], [0, 0, 1, 1], [], []>} : vector<8x8xf32>, vector<8x256xf32>, vector<8x256xf32> -> vector<8x256xf32>
    %50 = arith.addf %41, %49 : vector<8x256xf32>
    %c0_45 = arith.constant 0 : index
    %c128_46 = arith.constant 128 : index
    %51 = vector.load %arg14[%c0_45, %c128_46] : memref<8x384xf32, #tpu.memory_space<vmem>>, vector<8x256xf32>
    %c2_47 = arith.constant 2 : index
    %c0_48 = arith.constant 0 : index
    %c0_49 = arith.constant 0 : index
    %52 = vector.load %arg5[%c2_47, %c0_48, %c0_49] : memref<3x8x8xf32, #tpu.memory_space<vmem>>, vector<1x8x8xf32>
    %53 = vector.shape_cast %52 : vector<1x8x8xf32> to vector<8x8xf32>
    %cst_50 = arith.constant dense<0.000000e+00> : vector<8x256xf32>
    %54 = tpu.matmul %53, %51, %cst_50 {dimension_numbers = #tpu.dot_dimension_numbers<[1], [0], [0], [1], [0, 0, 1, 1], [], []>} : vector<8x8xf32>, vector<8x256xf32>, vector<8x256xf32> -> vector<8x256xf32>
    %55 = arith.addf %50, %54 : vector<8x256xf32>
    %c0_51 = arith.constant 0 : index
    %c0_52 = arith.constant 0 : index
    %56 = vector.load %arg6[%c0_51, %c0_52] : memref<8x1xf32, #tpu.memory_space<vmem>>, vector<8x1xf32>
    %57 = vector.broadcast %56 : vector<8x1xf32> to vector<8x256xf32>
    %58 = arith.addf %55, %57 : vector<8x256xf32>
    %cst_53 = arith.constant 0.000000e+00 : f32
    %59 = vector.broadcast %cst_53 : f32 to vector<8x256xf32>
    %60 = arith.maximumf %58, %59 : vector<8x256xf32>
    %c0_54 = arith.constant 0 : index
    %c0_55 = arith.constant 0 : index
    %61 = vector.load %arg7[%c0_54, %c0_55] : memref<8x8xf32, #tpu.memory_space<vmem>>, vector<8x8xf32>
    %cst_56 = arith.constant dense<0.000000e+00> : vector<8x256xf32>
    %62 = tpu.matmul %61, %32, %cst_56 {dimension_numbers = #tpu.dot_dimension_numbers<[1], [0], [0], [1], [0, 0, 1, 1], [], []>} : vector<8x8xf32>, vector<8x256xf32>, vector<8x256xf32> -> vector<8x256xf32>
    %c0_57 = arith.constant 0 : index
    %c0_58 = arith.constant 0 : index
    %63 = vector.load %arg8[%c0_57, %c0_58] : memref<8x1xf32, #tpu.memory_space<vmem>>, vector<8x1xf32>
    %64 = vector.broadcast %63 : vector<8x1xf32> to vector<8x256xf32>
    %65 = arith.addf %62, %64 : vector<8x256xf32>
    %66 = arith.addf %60, %65 : vector<8x256xf32>
    %cst_59 = arith.constant 0.000000e+00 : f32
    %67 = vector.broadcast %cst_59 : f32 to vector<8x256xf32>
    %68 = arith.maximumf %66, %67 : vector<8x256xf32>
    %c0_60 = arith.constant 0 : index
    %c128_61 = arith.constant 128 : index
    %69 = vector.load %arg14[%c0_60, %c128_61] : memref<8x384xf32, #tpu.memory_space<vmem>>, vector<8x256xf32>
    tpu.vector_store %arg14[%c0_60, %c128_61], %68 {strides = array<i32>} : memref<8x384xf32, #tpu.memory_space<vmem>>, vector<8x256xf32>,
    %c0_62 = arith.constant 0 : index
    %c124 = arith.constant 124 : index
    %70 = vector.load %arg14[%c0_62, %c124] : memref<8x384xf32, #tpu.memory_space<vmem>>, vector<8x256xf32>
    %c4_i32 = arith.constant 4 : i32
    %71 = vector.broadcast %c4_i32 : i32 to vector<8x256xi32>
    %72 = arith.cmpi sge, %2, %71 : vector<8x256xi32>
    %cst_63 = arith.constant 0.000000e+00 : f32
    %73 = vector.broadcast %cst_63 : f32 to vector<8x256xf32>
    %74 = arith.select %72, %70, %73 : vector<8x256xi1>, vector<8x256xf32>
    %c0_64 = arith.constant 0 : index
    %c0_65 = arith.constant 0 : index
    %c0_66 = arith.constant 0 : index
    %75 = vector.load %arg9[%c0_64, %c0_65, %c0_66] : memref<3x8x8xf32, #tpu.memory_space<vmem>>, vector<1x8x8xf32>
    %76 = vector.shape_cast %75 : vector<1x8x8xf32> to vector<8x8xf32>
    %cst_67 = arith.constant dense<0.000000e+00> : vector<8x256xf32>
    %77 = tpu.matmul %76, %74, %cst_67 {dimension_numbers = #tpu.dot_dimension_numbers<[1], [0], [0], [1], [0, 0, 1, 1], [], []>} : vector<8x8xf32>, vector<8x256xf32>, vector<8x256xf32> -> vector<8x256xf32>
    %c0_68 = arith.constant 0 : index
    %c126_69 = arith.constant 126 : index
    %78 = vector.load %arg14[%c0_68, %c126_69] : memref<8x384xf32, #tpu.memory_space<vmem>>, vector<8x256xf32>
    %c2_i32_70 = arith.constant 2 : i32
    %79 = vector.broadcast %c2_i32_70 : i32 to vector<8x256xi32>
    %80 = arith.cmpi sge, %2, %79 : vector<8x256xi32>
    %cst_71 = arith.constant 0.000000e+00 : f32
    %81 = vector.broadcast %cst_71 : f32 to vector<8x256xf32>
    %82 = arith.select %80, %78, %81 : vector<8x256xi1>, vector<8x256xf32>
    %c1_72 = arith.constant 1 : index
    %c0_73 = arith.constant 0 : index
    %c0_74 = arith.constant 0 : index
    %83 = vector.load %arg9[%c1_72, %c0_73, %c0_74] : memref<3x8x8xf32, #tpu.memory_space<vmem>>, vector<1x8x8xf32>
    %84 = vector.shape_cast %83 : vector<1x8x8xf32> to vector<8x8xf32>
    %cst_75 = arith.constant dense<0.000000e+00> : vector<8x256xf32>
    %85 = tpu.matmul %84, %82, %cst_75 {dimension_numbers = #tpu.dot_dimension_numbers<[1], [0], [0], [1], [0, 0, 1, 1], [], []>} : vector<8x8xf32>, vector<8x256xf32>, vector<8x256xf32> -> vector<8x256xf32>
    %86 = arith.addf %77, %85 : vector<8x256xf32>
    %c0_76 = arith.constant 0 : index
    %c128_77 = arith.constant 128 : index
    %87 = vector.load %arg14[%c0_76, %c128_77] : memref<8x384xf32, #tpu.memory_space<vmem>>, vector<8x256xf32>
    %c2_78 = arith.constant 2 : index
    %c0_79 = arith.constant 0 : index
    %c0_80 = arith.constant 0 : index
    %88 = vector.load %arg9[%c2_78, %c0_79, %c0_80] : memref<3x8x8xf32, #tpu.memory_space<vmem>>, vector<1x8x8xf32>
    %89 = vector.shape_cast %88 : vector<1x8x8xf32> to vector<8x8xf32>
    %cst_81 = arith.constant dense<0.000000e+00> : vector<8x256xf32>
    %90 = tpu.matmul %89, %87, %cst_81 {dimension_numbers = #tpu.dot_dimension_numbers<[1], [0], [0], [1], [0, 0, 1, 1], [], []>} : vector<8x8xf32>, vector<8x256xf32>, vector<8x256xf32> -> vector<8x256xf32>
    %91 = arith.addf %86, %90 : vector<8x256xf32>
    %c0_82 = arith.constant 0 : index
    %c0_83 = arith.constant 0 : index
    %92 = vector.load %arg10[%c0_82, %c0_83] : memref<8x1xf32, #tpu.memory_space<vmem>>, vector<8x1xf32>
    %93 = vector.broadcast %92 : vector<8x1xf32> to vector<8x256xf32>
    %94 = arith.addf %91, %93 : vector<8x256xf32>
    %cst_84 = arith.constant 0.000000e+00 : f32
    %95 = vector.broadcast %cst_84 : f32 to vector<8x256xf32>
    %96 = arith.maximumf %94, %95 : vector<8x256xf32>
    %c0_85 = arith.constant 0 : index
    %c128_86 = arith.constant 128 : index
    %97 = vector.load %arg14[%c0_85, %c128_86] : memref<8x384xf32, #tpu.memory_space<vmem>>, vector<8x256xf32>
    %c0_87 = arith.constant 0 : index
    %c128_88 = arith.constant 128 : index
    %98 = vector.load %arg14[%c0_87, %c128_88] : memref<8x384xf32, #tpu.memory_space<vmem>>, vector<8x256xf32>
    tpu.vector_store %arg14[%c0_87, %c128_88], %96 {strides = array<i32>} : memref<8x384xf32, #tpu.memory_space<vmem>>, vector<8x256xf32>,
    %c0_89 = arith.constant 0 : index
    %c124_90 = arith.constant 124 : index
    %99 = vector.load %arg14[%c0_89, %c124_90] : memref<8x384xf32, #tpu.memory_space<vmem>>, vector<8x256xf32>
    %c4_i32_91 = arith.constant 4 : i32
    %100 = vector.broadcast %c4_i32_91 : i32 to vector<8x256xi32>
    %101 = arith.cmpi sge, %2, %100 : vector<8x256xi32>
    %cst_92 = arith.constant 0.000000e+00 : f32
    %102 = vector.broadcast %cst_92 : f32 to vector<8x256xf32>
    %103 = arith.select %101, %99, %102 : vector<8x256xi1>, vector<8x256xf32>
    %c0_93 = arith.constant 0 : index
    %c0_94 = arith.constant 0 : index
    %c0_95 = arith.constant 0 : index
    %104 = vector.load %arg11[%c0_93, %c0_94, %c0_95] : memref<3x8x8xf32, #tpu.memory_space<vmem>>, vector<1x8x8xf32>
    %105 = vector.shape_cast %104 : vector<1x8x8xf32> to vector<8x8xf32>
    %cst_96 = arith.constant dense<0.000000e+00> : vector<8x256xf32>
    %106 = tpu.matmul %105, %103, %cst_96 {dimension_numbers = #tpu.dot_dimension_numbers<[1], [0], [0], [1], [0, 0, 1, 1], [], []>} : vector<8x8xf32>, vector<8x256xf32>, vector<8x256xf32> -> vector<8x256xf32>
    %c0_97 = arith.constant 0 : index
    %c126_98 = arith.constant 126 : index
    %107 = vector.load %arg14[%c0_97, %c126_98] : memref<8x384xf32, #tpu.memory_space<vmem>>, vector<8x256xf32>
    %c2_i32_99 = arith.constant 2 : i32
    %108 = vector.broadcast %c2_i32_99 : i32 to vector<8x256xi32>
    %109 = arith.cmpi sge, %2, %108 : vector<8x256xi32>
    %cst_100 = arith.constant 0.000000e+00 : f32
    %110 = vector.broadcast %cst_100 : f32 to vector<8x256xf32>
    %111 = arith.select %109, %107, %110 : vector<8x256xi1>, vector<8x256xf32>
    %c1_101 = arith.constant 1 : index
    %c0_102 = arith.constant 0 : index
    %c0_103 = arith.constant 0 : index
    %112 = vector.load %arg11[%c1_101, %c0_102, %c0_103] : memref<3x8x8xf32, #tpu.memory_space<vmem>>, vector<1x8x8xf32>
    %113 = vector.shape_cast %112 : vector<1x8x8xf32> to vector<8x8xf32>
    %cst_104 = arith.constant dense<0.000000e+00> : vector<8x256xf32>
    %114 = tpu.matmul %113, %111, %cst_104 {dimension_numbers = #tpu.dot_dimension_numbers<[1], [0], [0], [1], [0, 0, 1, 1], [], []>} : vector<8x8xf32>, vector<8x256xf32>, vector<8x256xf32> -> vector<8x256xf32>
    %115 = arith.addf %106, %114 : vector<8x256xf32>
    %c0_105 = arith.constant 0 : index
    %c128_106 = arith.constant 128 : index
    %116 = vector.load %arg14[%c0_105, %c128_106] : memref<8x384xf32, #tpu.memory_space<vmem>>, vector<8x256xf32>
    %c2_107 = arith.constant 2 : index
    %c0_108 = arith.constant 0 : index
    %c0_109 = arith.constant 0 : index
    %117 = vector.load %arg11[%c2_107, %c0_108, %c0_109] : memref<3x8x8xf32, #tpu.memory_space<vmem>>, vector<1x8x8xf32>
    %118 = vector.shape_cast %117 : vector<1x8x8xf32> to vector<8x8xf32>
    %cst_110 = arith.constant dense<0.000000e+00> : vector<8x256xf32>
    %119 = tpu.matmul %118, %116, %cst_110 {dimension_numbers = #tpu.dot_dimension_numbers<[1], [0], [0], [1], [0, 0, 1, 1], [], []>} : vector<8x8xf32>, vector<8x256xf32>, vector<8x256xf32> -> vector<8x256xf32>
    %120 = arith.addf %115, %119 : vector<8x256xf32>
    %c0_111 = arith.constant 0 : index
    %c0_112 = arith.constant 0 : index
    %121 = vector.load %arg12[%c0_111, %c0_112] : memref<8x1xf32, #tpu.memory_space<vmem>>, vector<8x1xf32>
    %122 = vector.broadcast %121 : vector<8x1xf32> to vector<8x256xf32>
    %123 = arith.addf %120, %122 : vector<8x256xf32>
    %cst_113 = arith.constant 0.000000e+00 : f32
    %124 = vector.broadcast %cst_113 : f32 to vector<8x256xf32>
    %125 = arith.maximumf %123, %124 : vector<8x256xf32>
    %126 = arith.addf %125, %97 : vector<8x256xf32>
    %cst_114 = arith.constant 0.000000e+00 : f32
    %127 = vector.broadcast %cst_114 : f32 to vector<8x256xf32>
    %128 = arith.maximumf %126, %127 : vector<8x256xf32>
    %c0_115 = arith.constant 0 : index
    %c0_116 = arith.constant 0 : index
    %129 = vector.load %arg13[%c0_115, %c0_116] : memref<8x256xf32, #tpu.memory_space<vmem>>, vector<8x256xf32>
    tpu.vector_store %arg13[%c0_115, %c0_116], %128 {strides = array<i32>} : memref<8x256xf32, #tpu.memory_space<vmem>>, vector<8x256xf32>,
    return
  }
  func.func @transform_0(%arg0: i32) -> (i32, i32) {
    %c0_i32 = arith.constant 0 : i32
    %c0_i32_0 = arith.constant 0 : i32
    return %c0_i32, %arg0 : i32, i32
  }
  func.func @transform_1(%arg0: i32) -> (i32, i32) {
    %c0_i32 = arith.constant 0 : i32
    %c0_i32_0 = arith.constant 0 : i32
    %c0_i32_1 = arith.constant 0 : i32
    return %c0_i32, %c0_i32_0 : i32, i32
  }
  func.func @transform_2(%arg0: i32) -> (i32, i32, i32) {
    %c0_i32 = arith.constant 0 : i32
    %c0_i32_0 = arith.constant 0 : i32
    %c0_i32_1 = arith.constant 0 : i32
    %c0_i32_2 = arith.constant 0 : i32
    return %c0_i32, %c0_i32_0, %c0_i32_1 : i32, i32, i32
  }
  func.func @transform_3(%arg0: i32) -> (i32, i32) {
    %c0_i32 = arith.constant 0 : i32
    %c0_i32_0 = arith.constant 0 : i32
    %c0_i32_1 = arith.constant 0 : i32
    return %c0_i32, %c0_i32_0 : i32, i32
  }
  func.func @transform_4(%arg0: i32) -> (i32, i32, i32) {
    %c0_i32 = arith.constant 0 : i32
    %c0_i32_0 = arith.constant 0 : i32
    %c0_i32_1 = arith.constant 0 : i32
    %c0_i32_2 = arith.constant 0 : i32
    return %c0_i32, %c0_i32_0, %c0_i32_1 : i32, i32, i32
  }
  func.func @transform_5(%arg0: i32) -> (i32, i32) {
    %c0_i32 = arith.constant 0 : i32
    %c0_i32_0 = arith.constant 0 : i32
    %c0_i32_1 = arith.constant 0 : i32
    return %c0_i32, %c0_i32_0 : i32, i32
  }
  func.func @transform_6(%arg0: i32) -> (i32, i32) {
    %c0_i32 = arith.constant 0 : i32
    %c0_i32_0 = arith.constant 0 : i32
    %c0_i32_1 = arith.constant 0 : i32
    return %c0_i32, %c0_i32_0 : i32, i32
  }
  func.func @transform_7(%arg0: i32) -> (i32, i32) {
    %c0_i32 = arith.constant 0 : i32
    %c0_i32_0 = arith.constant 0 : i32
    %c0_i32_1 = arith.constant 0 : i32
    return %c0_i32, %c0_i32_0 : i32, i32
  }
  func.func @transform_8(%arg0: i32) -> (i32, i32, i32) {
    %c0_i32 = arith.constant 0 : i32
    %c0_i32_0 = arith.constant 0 : i32
    %c0_i32_1 = arith.constant 0 : i32
    %c0_i32_2 = arith.constant 0 : i32
    return %c0_i32, %c0_i32_0, %c0_i32_1 : i32, i32, i32
  }
  func.func @transform_9(%arg0: i32) -> (i32, i32) {
    %c0_i32 = arith.constant 0 : i32
    %c0_i32_0 = arith.constant 0 : i32
    %c0_i32_1 = arith.constant 0 : i32
    return %c0_i32, %c0_i32_0 : i32, i32
  }
  func.func @transform_10(%arg0: i32) -> (i32, i32, i32) {
    %c0_i32 = arith.constant 0 : i32
    %c0_i32_0 = arith.constant 0 : i32
    %c0_i32_1 = arith.constant 0 : i32
    %c0_i32_2 = arith.constant 0 : i32
    return %c0_i32, %c0_i32_0, %c0_i32_1 : i32, i32, i32
  }
  func.func @transform_11(%arg0: i32) -> (i32, i32) {
    %c0_i32 = arith.constant 0 : i32
    %c0_i32_0 = arith.constant 0 : i32
    %c0_i32_1 = arith.constant 0 : i32
    return %c0_i32, %c0_i32_0 : i32, i32
  }
  func.func @transform_12(%arg0: i32) -> (i32, i32) {
    %c0_i32 = arith.constant 0 : i32
    %c0_i32_0 = arith.constant 0 : i32
    return %c0_i32, %arg0 : i32, i32
  }
}

</mosaic_0001>

<bundles_post_ra>
// kernel: tpu_custom_call.1
= control target key start
LH: loop header
LB: loop body
LE: loop exit
PB: predicated region body
PF: predicated region fallthrough
CT: control target
= control target key end

     0   :  { %17 = vsyncpa [#allocation4], 0  ;;  %s2560_s0 = inlined_call_operand.vmem [shape: f32[8,512], index: 0, kind: input, shape index: {}]   ;;  %s2561_s1 = inlined_call_operand.hbm [shape: s32[8,256], index: 1, kind: input, shape index: {}]   ;;  %s2562_s2 = inlined_call_operand.hbm [shape: f32[3,8,8], index: 2, kind: input, shape index: {}]   ;;  %s2563_s3 = inlined_call_operand.vmem [shape: f32[8,1], index: 3, kind: input, shape index: {}]   ;;  %s2564_s4 = inlined_call_operand.hbm [shape: f32[3,8,8], index: 4, kind: input, shape index: {}]   ;;  %s2565_s5 = inlined_call_operand.vmem [shape: f32[8,1], index: 5, kind: input, shape index: {}]   ;;  %s2566_s6 = inlined_call_operand.hbm [shape: f32[8,8], index: 6, kind: input, shape index: {}]   ;;  %s2567_s7 = inlined_call_operand.vmem [shape: f32[8,1], index: 7, kind: input, shape index: {}]   ;;  %s2568_s8 = inlined_call_operand.vmem [shape: f32[3,8,8], index: 8, kind: input, shape index: {}]   ;;  %s2569_s9 = inlined_call_operand.vmem [shape: f32[8,1], index: 9, kind: input, shape index: {}]   ;;  %s2570_s10 = inlined_call_operand.hbm [shape: f32[3,8,8], index: 10, kind: input, shape index: {}]   ;;  %s2571_s11 = inlined_call_operand.vmem [shape: f32[8,1], index: 11, kind: input, shape index: {}]   ;;  %s2572_s12 = inlined_call_operand.hbm [shape: f32[8,512], index: 12, kind: output, shape index: {}]  }
   0x1   :  { %18 = vsyncpa [#allocation7], 0 }
   0x2   :  { %19 = vsyncpa [#allocation10], 0 }
   0x3   :  { %20 = vsyncpa [#allocation5], 0 }
   0x4   :  { %22 = vsyncpa [#allocation5 + $0x1], 0  ;;  %s2233_s21 = smov 0   ;;  %s2235_s22 = smov 0  }
   0x5   :  { %s2237_s23 = smov 0   ;;  %s2239_s24 = smov 0  }
   0x6 LB: > { %2582 = sst [smem:[#allocation17_spill]] %s2149_s23  ;;  %s2254_s25 = sadd.s32 4294967295, %s2153_s24   ;;  %s2153_s24 = sphi %s2239_s24, %s2602_s24   ;;  %s2149_s23 = sphi %s2237_s23, %s2604_s23   ;;  %s2145_s22 = sphi %s2235_s22, %s2606_s22   ;;  %s2141_s21 = sphi %s2233_s21, %s2605_s21  }
   0x7   : > { %s1798_s26 = sadd.s32 4294967294, %s2153_s24   ;;  %s2258_s27 = sadd.s32 1, %s2153_s24  }
   0x8   : > { %2583 = sst [smem:[#allocation18_spill]] %s2258_s27  ;;  %s292_s28 = sadd.s32 1, %s2149_s23 }
   0x9   : > { %s289_s29 = ssub.s32 %s2153_s24, %s2258_s27  ;;  %p302_p0 = scmp.ne.s32.totalorder %s2149_s23, %s2145_s22 }
   0xa   : > { %p290_p1 = scmp.eq.s32.totalorder %s289_s29, 0  ;;  %p303_p2 = scmp.eq.s32.totalorder %s2254_s25, 1 }
   0xb   : > { %p308_p3 = scmp.ne.s32.totalorder %s2145_s22, %s2141_s21  ;;  %p309_p4 = scmp.eq.s32.totalorder %s1798_s26, 1 }
   0xc   : > { %s2269_s30 = scalar_select %p290_p1, %s2149_s23, %s292_s28  }
   0xd   : > { %p2271_p5 = por %p303_p2, %p302_p0  ;;  %p2275_p6 = por %p309_p4, %p308_p3 }
   0xe   : > { %2584 = sst [smem:[#allocation19_spill]] %s2269_s30  ;;  %p1799_p7 = scmp.ge.s32.totalorder %s2153_s24, 1 }
   0xf   : > { %s2585_s13 = scalar_select %p2271_p5, 1, 0 }
  0x10   : > { %s2586_s14 = scalar_select %p2275_p6, 1, 0 }
  0x11   : > { %p316_p8 = scmp.lt.s32.totalorder %s2153_s24, 3  ;;  %p2577_p9 = scmp.eq.s32.totalorder %s2254_s25, 0 }
  0x12   : > { %2587 = sst [smem:[#allocation20_spill]] %s2586_s14  ;;  %s2155_s16 = smov [#allocation6]  }
  0x13   : > { %p2282_p10 = pnand %p1799_p7, %p316_p8  ;;  %s339_s17 = sshll.u32 %s2155_s16, 4  ;;  %s340_s17 = int_to_ptr.vmem [resolvable:$true] %s339_s17 }
  0x14   : > { %s2156_s19 = smov [#allocation9]   ;;  %s2157_s26 = smov [#allocation3]  }
  0x15   : > { %s2588_s15 = scalar_select %p2282_p10, 1, 0 }
  0x16   : > { %p1874_p11 = pneg %p2282_p10  ;;  %s372_s20 = sshll.u32 %s2156_s19, 4  ;;  %s373_s20 = int_to_ptr.vmem [resolvable:$true] %s372_s20 }
  0x17   : > { %s329_s28 = sshll.u32 %s2157_s26, 4  ;;  %s1962_s16 = scalar_lea.vmem %s340_s17, 384  ;;  %s330_s28 = int_to_ptr.vmem [resolvable:$true] %s329_s28 }
  0x18   : > { %p2290_p12 = pnand %p2577_p9, %p1874_p11  ;;  %p1963_p0 = scmp.ne.s32.totalorder %s340_s17, %s1962_s16 }
  0x19   : > { %p1970_p3 = scmp.lt.s32.totalorder %s340_s17, %s340_s17  ;;  %p1971_p4 = scmp.lt.s32.totalorder %s1962_s16, %s1962_s16 }
  0x1a   : > { %p2296_p13 = pneg %p2290_p12 }
  0x1b   : > { %p1972_p7 = por %p1971_p4, %p1970_p3 }
  0x1c   : > { %p1965_p1 = pnand %p1963_p0, %p2296_p13 }
  0x1e   : > { %p1966_p2 = pneg %p1965_p1 }
  0x20   : > { %p1973_p8 = pnand %p1972_p7, %p1966_p2 }
  0x22   : > { %1976 = shalt.err (!%p1973_p8)
}
  0x23   : > { %s2580_s19 = smov 128   ;;  %s2159_s26 = smov 8  }
  0x24   : > { %1880 = dma.hbm_to_vmem [thread:$0]  (!%p2290_p12), %s2562_s2, 384, %s340_s17, [#allocation7], %s2580_s19, %s2580_s19, %s2159_s26  }
  0x25   : > { %s1988_s27 = scalar_lea.vmem %s373_s20, 128  ;;  %p1996_p3 = scmp.lt.s32.totalorder %s373_s20, %s373_s20 }
  0x26   : > { %p1989_p11 = scmp.ne.s32.totalorder %s373_s20, %s1988_s27  ;;  %p1997_p2 = scmp.lt.s32.totalorder %s1988_s27, %s1988_s27 }
  0x28   : > { %p1991_p0 = pnand %p1989_p11, %p2296_p13  ;;  %p1998_p4 = por %p1997_p2, %p1996_p3 }
  0x2a   : > { %p1992_p1 = pneg %p1991_p0 }
  0x2c   : > { %p1999_p7 = pnand %p1998_p4, %p1992_p1 }
  0x2e   : > { %2002 = shalt.err (!%p1999_p7)
}
  0x2f   : > { %1886 = dma.hbm_to_vmem [thread:$0]  (!%p2290_p12), %s2566_s6, 128, %s373_s20, [#allocation10]  }
  0x30   : > { %s2014_s23 = scalar_lea.vmem %s330_s28, 256  ;;  %p2022_p11 = scmp.lt.s32.totalorder %s330_s28, %s330_s28 }
  0x31   : > { %p2015_p8 = scmp.ne.s32.totalorder %s330_s28, %s2014_s23  ;;  %p2023_p0 = scmp.lt.s32.totalorder %s2014_s23, %s2014_s23 }
  0x33   : > { %p2017_p9 = pnand %p2015_p8, %p2296_p13  ;;  %p2024_p5 = por %p2023_p0, %p2022_p11 }
  0x35   : > { %p2018_p6 = pneg %p2017_p9 }
  0x37   : > { %p2025_p10 = pnand %p2024_p5, %p2018_p6 }
  0x39   : > { %2028 = shalt.err (!%p2025_p10)
}
  0x3a   : > { %1877 = dma.hbm_to_vmem [thread:$0]  (!%p2290_p12), %s2561_s1, 256, %s330_s28, [#allocation4]  }
  0x3b   : > { %s2160_s14 = smov [#allocation8]   ;;  %s2161_s20 = smov [#allocation11]  }
  0x3c   : > { %s355_s17 = sshll.u32 %s2160_s14, 4  ;;  %s391_s16 = sshll.u32 %s2161_s20, 4  ;;  %s356_s17 = int_to_ptr.vmem [resolvable:$true] %s355_s17  ;;  %s392_s16 = int_to_ptr.vmem [resolvable:$true] %s391_s16 }
  0x3d   : > { %s2040_s19 = scalar_lea.vmem %s356_s17, 384  ;;  %p2048_p2 = scmp.lt.s32.totalorder %s356_s17, %s356_s17 }
  0x3e   : > { %p2041_p1 = scmp.ne.s32.totalorder %s356_s17, %s2040_s19  ;;  %p2049_p5 = scmp.lt.s32.totalorder %s2040_s19, %s2040_s19 }
  0x40   : > { %p2043_p9 = pnand %p2041_p1, %p2296_p13  ;;  %p2050_p6 = por %p2049_p5, %p2048_p2 }
  0x42   : > { %p2044_p3 = pneg %p2043_p9 }
  0x44   : > { %p2051_p10 = pnand %p2050_p6, %p2044_p3 }
  0x46   : > { %2054 = shalt.err (!%p2051_p10)
}
  0x47   : > { %s2591_s23 = smov 128   ;;  %s2066_s30 = scalar_lea.vmem %s392_s16, 384 }
  0x48   : > { %1883 = dma.hbm_to_vmem [thread:$0]  (!%p2290_p12), %s2564_s4, 384, %s356_s17, [#allocation7], %s2591_s23, %s2591_s23, %s2159_s26  }
  0x49   : > { %p2067_p4 = scmp.ne.s32.totalorder %s392_s16, %s2066_s30  ;;  %p2074_p11 = scmp.lt.s32.totalorder %s392_s16, %s392_s16 }
  0x4a   : > { %p2075_p0 = scmp.lt.s32.totalorder %s2066_s30, %s2066_s30 }
  0x4b   : > { %p2069_p7 = pnand %p2067_p4, %p2296_p13 }
  0x4c   : > { %p2076_p1 = por %p2075_p0, %p2074_p11 }
  0x4d   : > { %p2070_p8 = pneg %p2069_p7 }
  0x4f   : > { %p2077_p9 = pnand %p2076_p1, %p2070_p8 }
  0x51   : > { %2080 = shalt.err (!%p2077_p9)
}
  0x52   : > { %1889 = dma.hbm_to_vmem [thread:$0]  (!%p2290_p12), %s2570_s10, 384, %s392_s16, [#allocation10], %s2591_s23, %s2591_s23, %s2159_s26  }
  0x53   : > { %p2592_p3 = scmp.ne.s32.totalorder %s2588_s15, 0 }
  0x54   : > { %p2593_p13 = scmp.eq.s32.totalorder (!%p2592_p3), %s2254_s25, 0 }
  0x55   : > { %419 = sbr.rel (%p2592_p3) target bundleno = 1437 (0x59d), region = 68 }
  0x5a   : > { %2124 = dma.done.wait (%p2593_p13), [#allocation4], 256   ;;  %p2594_p2 = pmov %p2593_p13 }
  0x5c   : > { %2126 = vsyncadd (%p2594_p2), [#allocation4], 4294967040  ;;  %p2595_p5 = pmov %p2594_p2 }
  0x5d   : > { %p2596_p6 = pmov %p2594_p2 }
  0x5e   : > { %2128 = dma.done.wait (%p2595_p5), [#allocation7], 768  }
  0x5f   : > { %2130 = vsyncadd (%p2596_p6), [#allocation7], 4294966528  ;;  %p2597_p10 = pmov %p2594_p2 }
  0x60   : > { %p2598_p12 = pmov %p2594_p2 }
  0x61   : > { %2132 = dma.done.wait (%p2597_p10), [#allocation10], 512  }
  0x62   : > { %2134 = vsyncadd (%p2598_p12), [#allocation10], 4294966784  ;;  %s1813_s15 = sshll.u32 %s2254_s25, 1  ;;  %v2162_v0 = vmov 0.0   ;;  %s2163_s18 = smov 1   ;;  %v2164_v2 = vmov 0  }
  0x63   : > { %515 = vrot.lane.b32.xlu1 %v2162_v0, %s2163_s18  ;;  %p478_p4 = scmp.lt.s32.totalorder %s1813_s15, 3  ;;  %598 = vmatprep.mubr.f32.mxu0 %v2162_v0  ;;  %s2165_s16 = smov 2   ;;  %v757_v4 = vld [vmem:[%s2563_s3] sm:$0xff]  ;;  %v2385_v7 = vld [vmem:[#allocation3 + $0x8] sm:$0xff]  ;;  %vm521_vm1 = vcmask 7168   ;;  %v529_v12 = vld [vmem:[#allocation6 + $0x8] sm:$0xff] }
  0x64   : > { %672 = vmatprep.mubr.f32.mxu1 %v2162_v0  ;;  %1949 = vset.pattern.permute.xlu0 %v2164_v2  ;;  %v2387_v9 = vld [vmem:[#allocation3] sm:$0xff]  ;;  %vm514_vm0 = vcmp.ge.s32.totalorder %v2385_v7, 1  ;;  %vm530_vm3 = vcmask 64512   ;;  %vm495_vm4 = vcmp.ge.s32.totalorder %v2385_v7, 2  ;;  %vm505_vm5 = vcmask 15360   ;;  %v512_v17 = vld [vmem:[#allocation6] sm:$0xff] }
  0x65   : > { %s2608_s15 = smov (!%p478_p4, %s1813_s15), 3  ;;  %1950 = vset.pattern.permute.xlu1 %v2164_v2  ;;  %vm513_vm2 = vcmp.ge.s32.totalorder %v2387_v9, 1  ;;  %vm494_vm6 = vcmp.ge.s32.totalorder %v2387_v9, 2  ;;  %v680_v18 = vld [vmem:[#allocation6 + $0x10] sm:$0xff]  ;;  %v801_v44 = vld [vmem:[#allocation8 + $0x8] sm:$0xff]  ;;  %v787_v47 = vld [vmem:[#allocation8] sm:$0xff] }
  0x66   : > { %s1814_s29 = sshll.u32 %s2608_s15, 3  ;;  %v1028_v35 = vld [vmem:[%s2565_s5] sm:$0xff]  ;;  %v951_v49 = vld [vmem:[#allocation8 + $0x10] sm:$0xff]  ;;  %s2166_s15 = smov 4   ;;  %vm1139_vm7 = vcmask 31744   ;;  %vm1129_vm8 = vcmp.ge.s32.totalorder %v2385_v7, 4 }
  0x67   : > { %s481_s20 = scalar_lea.vmem %s2560_s0, %s1814_s29  ;;  %v1039_v36 = vld [vmem:[%s2567_s7] sm:$0xff]  ;;  %vm1128_vm9 = vcmp.ge.s32.totalorder %v2387_v9, 4  ;;  %p2599_p8 = scmp.ne.s32.totalorder %s2585_s13, 0 }
  0x68   : > { %v2366_v1 = vld [vmem:[%s481_s20] sm:$0xff]  ;;  %v2372_v3 = vld [vmem:[%s481_s20 + $0x8] sm:$0xff] }
  0x69   : > { %517 = vrot.lane.b32.xlu0 %v2366_v1, %s2163_s18  ;;  %501 = vrot.lane.b32.xlu1 %v2366_v1, %s2165_s16  ;;  %v1038_v50 = vld [vmem:[#allocation9] sm:$0xff] }
  0x6d   : > { %519 = vrot.lane.b32.xlu0 %v2372_v3, %s2163_s18  ;;  %499 = vrot.lane.b32.xlu1 %v2162_v0, %s2165_s16 }
  0x71   : > { %503 = vrot.lane.b32.xlu0 %v2372_v3, %s2165_s16 }
  0x75   : > { %760 = vperm.xlu0 %1949, %v757_v4  }
  0x79   : > { %788 = vrot.lane.b32.xlu0 %v2162_v0, %s2163_s18 }
  0xd5   : > { %v516_v5 = vpop.permute.xlu1 %515 }
  0xdb   : > { %v518_v6 = vpop.permute.xlu0 %517  ;;  %v502_v8 = vpop.permute.xlu1 %501 }
  0xdc   : > { %v522_v13 = vsel %vm521_vm1, %v516_v5, %v518_v6 }
  0xdf   : > { %v520_v10 = vpop.permute.xlu0 %519  ;;  %v500_v14 = vpop.permute.xlu1 %499 }
  0xe0   : > { %v523_v11 = vsel %vm521_vm1, %v518_v6, %v520_v10  ;;  %v506_v19 = vsel %vm505_vm5, %v500_v14, %v502_v8  ;;  %v1387_v14 = vld [vmem:[%s2569_s9] sm:$0xff] }
  0xe1   : > { %1815 = vmatprep.subr.msk.mxu0 %vm514_vm0, %v523_v11 }
  0xe2   : > { %1816 = vmatpush1.msk.msra.mxu0 %vm513_vm2, %v522_v13 }
  0xe3   : > { %v504_v15 = vpop.permute.xlu0 %503  ;;  %1817 = vmatmul.mubr.msk.f32.vlgmr.msra.gmra.mxu0 %vm530_vm3, %v529_v12  ;;  %714 = vmatprep.subr.mxu0 %v2372_v3 }
  0xe4   : > { %v507_v16 = vsel %vm505_vm5, %v502_v8, %v504_v15  ;;  %715 = vmatpush1.msra.mxu0 %v2366_v1  ;;  %748 = vmatprep.mubr.f32.mxu0 %v2162_v0 }
  0xe5   : > { %1818 = vmatprep.subr.msk.mxu1 %vm495_vm4, %v507_v16 }
  0xe6   : > { %1819 = vmatpush1.msk.msra.mxu1 %vm494_vm6, %v506_v19 }
  0xe7   : > { %1820 = vmatmul.mubr.msk.f32.vlgmr.msra.gmra.mxu1 %vm530_vm3, %v512_v17  ;;  %1821 = vmatmul.mubr.msk.f32.vlgmr.msra.gmra.mxu0 %vm530_vm3, %v680_v18 }
  0xe8   : > { %869 = vmatprep.mubr.f32.mxu1 %v2162_v0  ;;  %943 = vmatprep.mubr.f32.mxu0 %v2162_v0 }
  0xf0   : > { %v761_v26 = vpop.permute.xlu0 %760 }
  0xf4   : > { %v789_v37 = vpop.permute.xlu0 %788 }
 0x1a3   : > { %v600_v20 = vpop.f32.mrf.mxu0 }
 0x1a5   : > { %v602_v21 = vpop.f32.mrf.mxu0 }
 0x1a7   : > { %v674_v22 = vpop.f32.mrf.mxu1  ;;  %v750_v23 = vpop.f32.mrf.mxu0 }
 0x1a8   : > { %v675_v24 = vadd.f32 %v674_v22, %v600_v20  ;;  %v1830_v22 = vld [vmem:[%s2568_s8 + $0x8] sm:$0xff] }
 0x1a9   : > { %v676_v25 = vpop.f32.mrf.mxu1  ;;  %v752_v29 = vpop.f32.mrf.mxu0 }
 0x1aa   : > { %v755_v27 = vadd.f32 %v750_v23, %v675_v24  ;;  %v677_v28 = vadd.f32 %v676_v25, %v602_v21  ;;  %v1146_v25 = vld [vmem:[%s2568_s8] sm:$0xff] }
 0x1ac   : > { %v756_v30 = vadd.f32 %v752_v29, %v677_v28  ;;  %v763_v31 = vadd.f32 %v761_v26, %v755_v27  ;;  %v1837_v27 = vld [vmem:[%s2568_s8 + $0x10] sm:$0xff] }
 0x1ae   : > { %v764_v32 = vadd.f32 %v761_v26, %v756_v30  ;;  %v765_v33 = vmax.f32 %v763_v31, 0.0 }
 0x1b0   : > { %v766_v34 = vmax.f32 %v764_v32, 0.0  ;;  %790 = vrot.lane.b32.xlu1 %v765_v33, %s2163_s18 }
 0x1b2   : > { %779 = vrot.lane.b32.xlu0 %v766_v34, %s2165_s16 }
 0x1b4   : > { %777 = vrot.lane.b32.xlu1 %v765_v33, %s2165_s16 }
 0x1b6   : > { %1031 = vperm.xlu0 %1949, %v1028_v35  }
 0x1b8   : > { %792 = vrot.lane.b32.xlu1 %v766_v34, %s2163_s18 }
 0x1ba   : > { %1147 = vrot.lane.b32.xlu0 %v2162_v0, %s2165_s16 }
 0x1bc   : > { %775 = vrot.lane.b32.xlu1 %v2162_v0, %s2165_s16 }
 0x1c0   : > { %1042 = vperm.xlu1 %1950, %v1039_v36  }
 0x222   : > { %v791_v38 = vpop.permute.xlu1 %790 }
 0x223   : > { %v794_v45 = vsel %vm521_vm1, %v789_v37, %v791_v38 }
 0x224   : > { %v780_v39 = vpop.permute.xlu0 %779 }
 0x226   : > { %v778_v40 = vpop.permute.xlu1 %777 }
 0x227   : > { %v782_v41 = vsel %vm505_vm5, %v778_v40, %v780_v39 }
 0x228   : > { %1825 = vmatprep.subr.msk.mxu0 %vm495_vm4, %v782_v41 }
 0x22a   : > { %v793_v42 = vpop.permute.xlu1 %792 }
 0x22b   : > { %v795_v43 = vsel %vm521_vm1, %v791_v38, %v793_v42 }
 0x22c   : > { %1822 = vmatprep.subr.msk.mxu1 %vm514_vm0, %v795_v43  ;;  %v1658_v43 = vld [vmem:[%s2571_s11] sm:$0xff] }
 0x22d   : > { %1823 = vmatpush1.msk.msra.mxu1 %vm513_vm2, %v794_v45 }
 0x22e   : > { %1824 = vmatmul.mubr.msk.f32.vlgmr.msra.gmra.mxu1 %vm530_vm3, %v801_v44  ;;  %985 = vmatprep.subr.mxu1 %v766_v34  ;;  %v776_v46 = vpop.permute.xlu1 %775 }
 0x22f   : > { %v781_v48 = vsel %vm505_vm5, %v776_v46, %v778_v40  ;;  %986 = vmatpush1.msra.mxu1 %v765_v33  ;;  %1019 = vmatprep.mubr.f32.mxu1 %v2162_v0 }
 0x230   : > { %1826 = vmatpush1.msk.msra.mxu0 %vm494_vm6, %v781_v48 }
 0x231   : > { %1827 = vmatmul.mubr.msk.f32.vlgmr.msra.gmra.mxu0 %vm530_vm3, %v787_v47  ;;  %1078 = vmatprep.subr.mxu0 %v2372_v3  ;;  %v1032_v61 = vpop.permute.xlu0 %1031 }
 0x232   : > { %1828 = vmatmul.mubr.msk.f32.vlgmr.msra.gmra.mxu1 %vm530_vm3, %v951_v49  ;;  %1079 = vmatpush1.msra.mxu0 %v2366_v1 }
 0x233   : > { %1112 = vmatprep.mubr.f32.mxu0 %v2162_v0  ;;  %1228 = vmatprep.mubr.f32.mxu1 %v2162_v0 }
 0x235   : > { %1829 = vmatmul.mubr.msk.f32.vlgmr.msra.gmra.mxu0 %vm530_vm3, %v1038_v50  ;;  %v1148_v15 = vpop.permute.xlu0 %1147 }
 0x236   : > { %1302 = vmatprep.mubr.f32.mxu0 %v2162_v0 }
 0x23b   : > { %v1043_v57 = vpop.permute.xlu1 %1042 }
 0x2ee   : > { %v871_v51 = vpop.f32.mrf.mxu1 }
 0x2f0   : > { %v873_v52 = vpop.f32.mrf.mxu1 }
 0x2f1   : > { %v945_v53 = vpop.f32.mrf.mxu0 }
 0x2f2   : > { %v946_v54 = vadd.f32 %v945_v53, %v871_v51  ;;  %v1021_v55 = vpop.f32.mrf.mxu1  ;;  %v1431_v51 = vld [vmem:[#allocation11 + $0x8] sm:$0xff] }
 0x2f3   : > { %v947_v56 = vpop.f32.mrf.mxu0 }
 0x2f4   : > { %v1026_v58 = vadd.f32 %v1021_v55, %v946_v54  ;;  %v948_v59 = vadd.f32 %v947_v56, %v873_v52  ;;  %v1023_v60 = vpop.f32.mrf.mxu1  ;;  %v1417_v54 = vld [vmem:[#allocation11] sm:$0xff]  ;;  %v1581_v56 = vld [vmem:[#allocation11 + $0x10] sm:$0xff] }
 0x2f5   : > { %v1114_v62 = vpop.f32.mrf.mxu0 }
 0x2f6   : > { %v1034_v63 = vadd.f32 %v1032_v61, %v1026_v58  ;;  %v1027_v1 = vadd.f32 %v1023_v60, %v948_v59  ;;  %v1115_v2 = vadd.f32 %v1114_v62, %v1043_v57 }
 0x2f7   : > { %v1116_v3 = vpop.f32.mrf.mxu0 }
 0x2f8   : > { %v1036_v4 = vmax.f32 %v1034_v63, 0.0  ;;  %v1035_v5 = vadd.f32 %v1032_v61, %v1027_v1  ;;  %v1117_v8 = vadd.f32 %v1116_v3, %v1043_v57 }
 0x2fa   : > { %v1037_v6 = vmax.f32 %v1035_v5, 0.0  ;;  %v1119_v10 = vadd.f32 %v1115_v2, %v1036_v4 }
 0x2fc   : > { %v1120_v11 = vadd.f32 %v1117_v8, %v1037_v6  ;;  %v2449_v12 = vmax.f32 %v1119_v10, 0.0 }
 0x2fe   : > { %1135 = vrot.lane.b32.xlu1 %v2449_v12, %s2166_s15  ;;  %1149 = vrot.lane.b32.xlu0 %v2449_v12, %s2165_s16  ;;  %v2455_v13 = vmax.f32 %v1120_v11, 0.0 }
 0x302   : > { %1151 = vrot.lane.b32.xlu1 %v2455_v13, %s2165_s16  ;;  %1137 = vrot.lane.b32.xlu0 %v2455_v13, %s2166_s15 }
 0x306   : > { %1133 = vrot.lane.b32.xlu1 %v2162_v0, %s2166_s15  ;;  %1390 = vperm.xlu0 %1949, %v1387_v14  }
 0x30a   : > { %1418 = vrot.lane.b32.xlu1 %v2162_v0, %s2165_s16 }
 0x370   : > { %v1136_v16 = vpop.permute.xlu1 %1135  ;;  %v1150_v17 = vpop.permute.xlu0 %1149 }
 0x371   : > { %v1153_v23 = vsel %vm505_vm5, %v1148_v15, %v1150_v17 }
 0x374   : > { %v1152_v18 = vpop.permute.xlu1 %1151  ;;  %v1138_v19 = vpop.permute.xlu0 %1137 }
 0x375   : > { %v1154_v20 = vsel %vm505_vm5, %v1150_v17, %v1152_v18  ;;  %v1141_v21 = vsel %vm1139_vm7, %v1136_v16, %v1138_v19 }
 0x376   : > { %1831 = vmatprep.subr.msk.mxu1 %vm495_vm4, %v1154_v20  ;;  %1834 = vmatprep.subr.msk.mxu0 %vm1129_vm8, %v1141_v21 }
 0x377   : > { %1832 = vmatpush1.msk.msra.mxu1 %vm494_vm6, %v1153_v23 }
 0x378   : > { %v1134_v24 = vpop.permute.xlu1 %1133  ;;  %1833 = vmatmul.mubr.msk.f32.vlgmr.msra.gmra.mxu1 %vm530_vm3, %v1830_v22  ;;  %1344 = vmatprep.subr.mxu1 %v2455_v13 }
 0x379   : > { %v1140_v26 = vsel %vm1139_vm7, %v1134_v24, %v1136_v16  ;;  %1345 = vmatpush1.msra.mxu1 %v2449_v12  ;;  %1378 = vmatprep.mubr.f32.mxu1 %v2162_v0 }
 0x37a   : > { %1835 = vmatpush1.msk.msra.mxu0 %vm1128_vm9, %v1140_v26 }
 0x37b   : > { %1836 = vmatmul.mubr.msk.f32.vlgmr.msra.gmra.mxu0 %vm530_vm3, %v1146_v25 }
 0x37c   : > { %1838 = vmatmul.mubr.msk.f32.vlgmr.msra.gmra.mxu1 %vm530_vm3, %v1837_v27  ;;  %1499 = vmatprep.mubr.f32.mxu0 %v2162_v0  ;;  %v1419_v44 = vpop.permute.xlu1 %1418 }
 0x37d   : > { %1573 = vmatprep.mubr.f32.mxu1 %v2162_v0 }
 0x381   : > { %v1391_v37 = vpop.permute.xlu0 %1390 }
 0x438   : > { %v1230_v28 = vpop.f32.mrf.mxu1 }
 0x43a   : > { %v1232_v29 = vpop.f32.mrf.mxu1 }
 0x43b   : > { %v1304_v30 = vpop.f32.mrf.mxu0 }
 0x43c   : > { %v1305_v31 = vadd.f32 %v1304_v30, %v1230_v28  ;;  %v1380_v32 = vpop.f32.mrf.mxu1 }
 0x43d   : > { %v1306_v33 = vpop.f32.mrf.mxu0 }
 0x43e   : > { %v1385_v34 = vadd.f32 %v1380_v32, %v1305_v31  ;;  %v1307_v35 = vadd.f32 %v1306_v33, %v1232_v29  ;;  %v1382_v36 = vpop.f32.mrf.mxu1 }
 0x440   : > { %v1393_v38 = vadd.f32 %v1391_v37, %v1385_v34  ;;  %v1386_v39 = vadd.f32 %v1382_v36, %v1307_v35 }
 0x442   : > { %v1395_v40 = vmax.f32 %v1393_v38, 0.0  ;;  %v1394_v41 = vadd.f32 %v1391_v37, %v1386_v39 }
 0x444   : > { %1407 = vrot.lane.b32.xlu0 %v1395_v40, %s2166_s15  ;;  %1420 = vrot.lane.b32.xlu1 %v1395_v40, %s2165_s16  ;;  %v1396_v42 = vmax.f32 %v1394_v41, 0.0 }
 0x448   : > { %1422 = vrot.lane.b32.xlu0 %v1396_v42, %s2165_s16  ;;  %1409 = vrot.lane.b32.xlu1 %v1396_v42, %s2166_s15  ;;  %s474_s16 = sand.u32 1, %s2145_s22  }
 0x449   : > { %s1812_s14 = sshll.u32 %s474_s16, 4  ;;  %s1675_s23 = scalar_lea.sflag [#allocation5], %s474_s16 }
 0x44a   : > { %s476_s18 = scalar_lea.vmem [#allocation12], %s1812_s14 }
 0x44b   : > { %s1689_s29 = sshll.u32 %s476_s18, 4  ;;  %s1690_s29 = int_to_ptr.vmem [resolvable:$true] %s1689_s29 }
 0x44c   : > { %1405 = vrot.lane.b32.xlu0 %v2162_v0, %s2166_s15  ;;  %1661 = vperm.xlu1 %1950, %v1658_v43   ;;  %s1851_s15 = sshll.u32 %s2254_s25, 8  ;;  %s2081_s28 = scalar_lea.vmem %s1690_s29, 256 }
 0x44d   : > { %s1687_s20 = scalar_lea.hbm %s2572_s12, %s1851_s15  ;;  %p2082_p7 = scmp.ne.s32.totalorder %s1690_s29, %s2081_s28 }
 0x44e   : > { %s2167_s25 = smov [#allocation12]  }
 0x44f   : > { %p2083_p11 = pnand %p2082_p7, %p2599_p8  ;;  %s2085_s27 = sshll.u32 %s2167_s25, 4  ;;  %s2086_s27 = int_to_ptr.vmem [resolvable:$false] %s2085_s27 }
 0x450   : > { %s2087_s30 = scalar_lea.vmem %s2086_s27, 512  ;;  %p2088_p1 = scmp.lt.s32.totalorder %s1690_s29, %s2086_s27 }
 0x451   : > { %p2084_p0 = pneg %p2083_p11  ;;  %p2089_p9 = scmp.lt.s32.totalorder %s2087_s30, %s2081_s28 }
 0x453   : > { %p2090_p3 = por %p2089_p9, %p2088_p1 }
 0x455   : > { %p2091_p13 = pnand %p2090_p3, %p2084_p0 }
 0x4b6   : > { %v1408_v45 = vpop.permute.xlu0 %1407  ;;  %v1421_v46 = vpop.permute.xlu1 %1420 }
 0x4b7   : > { %v1424_v52 = vsel %vm505_vm5, %v1419_v44, %v1421_v46 }
 0x4ba   : > { %v1423_v47 = vpop.permute.xlu0 %1422  ;;  %v1410_v48 = vpop.permute.xlu1 %1409 }
 0x4bb   : > { %v1425_v49 = vsel %vm505_vm5, %v1421_v46, %v1423_v47  ;;  %v1412_v50 = vsel %vm1139_vm7, %v1408_v45, %v1410_v48 }
 0x4bc   : > { %1839 = vmatprep.subr.msk.mxu0 %vm495_vm4, %v1425_v49  ;;  %1842 = vmatprep.subr.msk.mxu1 %vm1129_vm8, %v1412_v50 }
 0x4bd   : > { %1840 = vmatpush1.msk.msra.mxu0 %vm494_vm6, %v1424_v52 }
 0x4be   : > { %v1406_v53 = vpop.permute.xlu0 %1405  ;;  %1615 = vmatprep.subr.mxu0 %v1396_v42  ;;  %1841 = vmatmul.mubr.msk.f32.vlgmr.msra.gmra.mxu0 %vm530_vm3, %v1431_v51 }
 0x4bf   : > { %v1411_v55 = vsel %vm1139_vm7, %v1406_v53, %v1408_v45  ;;  %1616 = vmatpush1.msra.mxu0 %v1395_v40  ;;  %1649 = vmatprep.mubr.f32.mxu0 %v2162_v0 }
 0x4c0   : > { %1843 = vmatpush1.msk.msra.mxu1 %vm1128_vm9, %v1411_v55 }
 0x4c1   : > { %1844 = vmatmul.mubr.msk.f32.vlgmr.msra.gmra.mxu1 %vm530_vm3, %v1417_v54 }
 0x4c2   : > { %1845 = vmatmul.mubr.msk.f32.vlgmr.msra.gmra.mxu0 %vm530_vm3, %v1581_v56 }
 0x4c7   : > { %v1662_v0 = vpop.permute.xlu1 %1661 }
 0x57e   : > { %v1501_v7 = vpop.f32.mrf.mxu0 }
 0x580   : > { %v1503_v57 = vpop.f32.mrf.mxu0 }
 0x581   : > { %v1575_v58 = vpop.f32.mrf.mxu1 }
 0x582   : > { %v1576_v59 = vadd.f32 %v1575_v58, %v1501_v7  ;;  %v1651_v60 = vpop.f32.mrf.mxu0 }
 0x583   : > { %v1577_v61 = vpop.f32.mrf.mxu1 }
 0x584   : > { %v1578_v62 = vadd.f32 %v1577_v61, %v1503_v57  ;;  %v1656_v63 = vadd.f32 %v1651_v60, %v1576_v59  ;;  %v1653_v1 = vpop.f32.mrf.mxu0 }
 0x586   : > { %v1664_v2 = vadd.f32 %v1662_v0, %v1656_v63  ;;  %v1657_v9 = vadd.f32 %v1653_v1, %v1578_v62 }
 0x588   : > { %v1666_v3 = vmax.f32 %v1664_v2, 0.0  ;;  %v1665_v4 = vadd.f32 %v1662_v0, %v1657_v9 }
 0x58a   : > { %v1668_v5 = vadd.f32 %v1666_v3, %v2449_v12  ;;  %v1667_v6 = vmax.f32 %v1665_v4, 0.0 }
 0x58c   : > { %v1670_v8 = vmax.f32 %v1668_v5, 0.0  ;;  %v1669_v10 = vadd.f32 %v1667_v6, %v2455_v13 }
 0x58e   : > { %v1671_v11 = vmax.f32 %v1669_v10, 0.0  ;;  %1672 = vst [vmem:[%s476_s18] sm:$0xff] %v1670_v8 }
 0x590   : > { %1673 = vst [vmem:[%s476_s18 + $0x8] sm:$0xff] %v1671_v11 }
 0x591   : > { %2094 = shalt.err (!%p2091_p13)
}
 0x592   : > { %s2095_s19 = scalar_lea.hbm %s1687_s20, 256  ;;  %s2099_s15 = scalar_lea.hbm %s2572_s12, 512 }
 0x593   : > { %p2096_p2 = scmp.ne.s32.totalorder %s1687_s20, %s2095_s19  ;;  %p2100_p10 = scmp.lt.s32.totalorder %s1687_s20, %s2572_s12 }
 0x594   : > { %p2101_p12 = scmp.lt.s32.totalorder %s2099_s15, %s2095_s19 }
 0x595   : > { %p2097_p5 = pnand %p2096_p2, %p2599_p8 }
 0x596   : > { %p2102_p4 = por %p2101_p12, %p2100_p10 }
 0x597   : > { %p2098_p6 = pneg %p2097_p5 }
 0x599   : > { %p2103_p7 = pnand %p2102_p4, %p2098_p6 }
 0x59b   : > { %2106 = shalt.err (!%p2103_p7)
}
 0x59c   : > { %1872 = dma.vmem_to_hbm [thread:$0]  (%p2599_p8), %s1690_s29, 256, %s1687_s20, %s1675_s23  }
 0x59d PF: > { %s2600_s17 = sld [smem:[#allocation20_spill]]  ;;  %p1904_p11 = scmp.ge.s32.totalorder %s2153_s24, 2 }
 0x59e   : > { %s1701_s28 = sand.u32 1, %s2141_s21  }
 0x59f   : > { %s1702_s25 = scalar_lea.sflag [#allocation5], %s1701_s28 }
 0x5a3   : > { %p2601_p0 = scmp.ne.s32.totalorder %s2600_s17, 0 }
 0x5a5   : > { %p1891_p1 = pnand %p1904_p11, %p2601_p0 }
 0x5a7   : > { %p1892_p9 = pneg %p1891_p1 }
 0x5a9   : > { %2136 = dma.done.wait (%p1892_p9), %s1702_s25, 256  }
 0x5aa   : > { %2138 = vsyncadd (%p1892_p9), %s1702_s25, 4294967040  ;;  %s2602_s24 = sld [smem:[#allocation18_spill]]  ;;  %s2605_s21 = smov %s2145_s22 }
 0x5ab   : > { %s2603_s27 = sld [smem:[#allocation17_spill]] }
 0x5ac   : > { %s2604_s23 = sld [smem:[#allocation19_spill]] }
 0x5b0   : > { %p25_p3 = scmp.ge.s32.totalorder %s2602_s24, 4  }
 0x5b1   : > { %s2606_s22 = smov %s2603_s27 }
 0x5b2   :  { %27 = sbr.rel (!%p25_p3) target bundleno = 6 (0x6), region = 132 }
 0x5b7   :  { %1707 = vsyncpa [#allocation4], 1 }
 0x5b8   :  { %1709 = vsyncpa [#allocation4 + $0x1], 1 }
 0x5b9   :  { %1710 = vsyncpa [#allocation7], 1 }
 0x5ba   :  { %1711 = vsyncpa [#allocation10], 1 }
 0x5bb   :  { %1712 = vsyncpa [#allocation5], 1 }
 0x5bc   :  { %1714 = vsyncpa [#allocation5 + $0x1], 1 }

</bundles_post_ra>
